<compile_context>
chip_gen: v5e
topology: v5e:2x2
jax: 0.10.0
libtpu: 0.0.40
codegen_flags: <defaults>
</compile_context>

<pallas_src>
import functools

import jax
import jax.numpy as jnp
from jax.experimental import pallas as pl
from jax.experimental.pallas import tpu as pltpu


# --------------------------------- kernels ----------------------------------


def _normalize_rows_kernel(x_ref, o_ref, *, scale_numerator: float):
    """Single pass: full row resident.  out = x * scale / sum(x, axis=-1)."""
    x = x_ref[...]
    # f32 accumulation for the per-row sum; do NOT promote the whole tile.
    s = jnp.sum(x.astype(jnp.float32), axis=-1, keepdims=True)           # (TN, 1)
    inv = jnp.float32(scale_numerator) * pl.reciprocal(s, approx=True)   # EUP slot
    o_ref[...] = (x * inv.astype(x.dtype)).astype(o_ref.dtype)


def _row_sum_kernel(x_ref, s_ref, *, td: int, d: int):
    """Two-pass (a): accumulate per-row sums across the D grid axis.

    The final D tile may be ragged (d % td != 0); mask it in-kernel so no
    padded HBM copy of x is ever materialized.
    """
    k = pl.program_id(1)

    @pl.when(k == 0)
    def _():
        s_ref[...] = jnp.zeros_like(s_ref)

    x = x_ref[...].astype(jnp.float32)
    col = jax.lax.broadcasted_iota(jnp.int32, x.shape, 1) + k * td
    x = jnp.where(col < d, x, 0.0)
    s_ref[...] += jnp.sum(x, axis=-1, keepdims=True)


def _scale_rows_kernel(x_ref, s_ref, o_ref, *, scale_numerator: float):
    """Two-pass (b): elementwise scale by precomputed per-row sums."""
    x = x_ref[...]
    inv = jnp.float32(scale_numerator) * pl.reciprocal(s_ref[...], approx=True)
    o_ref[...] = (x * inv.astype(x.dtype)).astype(o_ref.dtype)


# --------------------------------- wrapper ----------------------------------


def _round_up(v: int, m: int) -> int:
    return -(-v // m) * m


def _sublane(itemsize: int) -> int:
    # f32 -> 8, bf16 -> 16, int8/fp8 -> 32
    return 8 * (4 // itemsize)


def input_spike_image_forward(
    x: jax.Array,
    number_of_spikes: int = -1,
    normalize: bool = True,
    reshape: bool = False,           # irrelevant on the number_of_spikes < 1 path
    *,
    max_block_bytes: int = 2 << 20,  # ~2 MiB blocks -> ~8 MiB of double buffers,
                                     # fits default scoped VMEM on v5e/v6e/v7x
    force_pallas: bool = False,
) -> jax.Array:
    """Forward pass of InputSpikeImage.  x is NCHW."""
    if number_of_spikes >= 1:
        # TODO(synk): SpikeLayer / SpikeCountLayer (multinomial sampling +
        # histogram) not translated; only the default pass-through / normalize
        # path is implemented.
        raise NotImplementedError("spike-generation path not implemented")

    if not normalize:
        # output = input.type(input.dtype) -> identity
        return x

    n, c, h, w = x.shape
    d = c * h * w
    scale = float(d)

    itemsize = jnp.dtype(x.dtype).itemsize
    sub = _sublane(itemsize)

    x2 = x.reshape(n, d)  # row-major contiguous -> free reshape

    # ---- tiny-problem short circuit: XLA's fused reduce+scale already hits
    # the HBM roofline and avoids per-grid-step / plumbing overhead ----------
    if not force_pallas and (d < 512 or n * d * itemsize <= (1 << 20)):
        s = jnp.sum(x2.astype(jnp.float32), axis=-1, keepdims=True)
        inv = (jnp.float32(scale) / s).astype(x.dtype)
        return (x2 * inv).astype(x.dtype).reshape(n, c, h, w)

    row_bytes = d * itemsize
    # Single pass only if a legal batch block (a sublane group of rows, or the
    # whole batch when n < sub) fits the VMEM block budget.
    single_pass = (sub * row_bytes <= max_block_bytes) or (n * row_bytes <= max_block_bytes)

    if single_pass:
        # ---- single pass: tile the batch axis only --------------------------
        if sub * row_bytes > max_block_bytes:
            # only reachable when n < sub and the whole array fits one block
            tn = n
        else:
            tn = (max_block_bytes // row_bytes) // sub * sub   # >= sub, rounded DOWN
            tn = min(tn, _round_up(n, sub))
            if n > sub:
                # keep >= ~4 grid steps so both TCs get work on v7x
                tn = min(tn, max(sub, _round_up(pl.cdiv(n, 4), sub)))
            if tn >= n:
                tn = n  # block dim == full array dim is always legal
        out2 = pl.pallas_call(
            functools.partial(_normalize_rows_kernel, scale_numerator=scale),
            out_shape=jax.ShapeDtypeStruct((n, d), x.dtype),
            grid=(pl.cdiv(n, tn),),
            in_specs=[pl.BlockSpec((tn, d), lambda i: (i, 0))],
            out_specs=pl.BlockSpec((tn, d), lambda i: (i, 0)),
            compiler_params=pltpu.CompilerParams(
                dimension_semantics=("parallel",)
            ),
        )(x2)
    else:
        # ---- two passes: one sublane group of rows exceeds the block budget -
        tn = n if n < sub else sub
        td = max(128, (max_block_bytes // (tn * itemsize)) // 128 * 128)
        td = min(td, _round_up(d, 128))
        gn, gd = pl.cdiv(n, tn), pl.cdiv(d, td)

        # pass 1: exact per-row sums (f32); reduction axis last / "arbitrary";
        # ragged last D tile masked in-kernel (no padded HBM copy of x).
        sums = pl.pallas_call(
            functools.partial(_row_sum_kernel, td=td, d=d),
            out_shape=jax.ShapeDtypeStruct((n, 1), jnp.float32),
            grid=(gn, gd),
            in_specs=[pl.BlockSpec((tn, td), lambda i, k: (i, k))],
            out_specs=pl.BlockSpec((tn, 1), lambda i, k: (i, 0)),
            compiler_params=pltpu.CompilerParams(
                dimension_semantics=("parallel", "arbitrary")
            ),
        )(x2)

        # pass 2: fully parallel elementwise scale
        out2 = pl.pallas_call(
            functools.partial(_scale_rows_kernel, scale_numerator=scale),
            out_shape=jax.ShapeDtypeStruct((n, d), x.dtype),
            grid=(gn, gd),
            in_specs=[
                pl.BlockSpec((tn, td), lambda i, k: (i, k)),
                pl.BlockSpec((tn, 1), lambda i, k: (i, 0)),
            ],
            out_specs=pl.BlockSpec((tn, td), lambda i, k: (i, k)),
            compiler_params=pltpu.CompilerParams(
                dimension_semantics=("parallel", "parallel")
            ),
        )(x2, sums)

    return out2.reshape(n, c, h, w)


# --------------------------------- reference --------------------------------


def _reference_forward(x: jax.Array) -> jax.Array:
    # Pure-JAX mirror of the PyTorch code (number_of_spikes < 1, normalize=True).
    # NOTE: like PyTorch, an all-zero image produces inf/nan (division by zero).
    s = x.sum(axis=(-1, -2, -3), keepdims=True)
    return x * x.shape[-1] * x.shape[-2] * x.shape[-3] / s


if __name__ == "__main__":
    key = jax.random.PRNGKey(0)
    # small NCHW input, strictly positive so the per-batch sum is nonzero
    x = jax.random.uniform(
        key, (2, 4, 16, 16), dtype=jnp.float32, minval=0.1, maxval=1.0
    )
    ref = _reference_forward(x)

    # Pallas single-pass (batch-tiled) path (forced past the tiny-input short circuit)
    out = input_spike_image_forward(x, number_of_spikes=-1, normalize=True,
                                    force_pallas=True)
    out = jax.block_until_ready(out)
    assert out.shape == x.shape and out.dtype == x.dtype
    # approx reciprocal (EUP) -> relaxed tolerance vs exact divide reference
    assert jnp.allclose(out, ref, rtol=2e-3, atol=2e-3), "mismatch (single-pass)"

    # two-pass fallback with a ragged (non-128-multiple) row, forced via a tiny budget
    x_odd = jax.random.uniform(
        jax.random.PRNGKey(0), (4, 3, 10, 10), dtype=jnp.float32, minval=0.1, maxval=1.0
    )
    ref_odd = _reference_forward(x_odd)
    out_odd = input_spike_image_forward(x_odd, force_pallas=True, max_block_bytes=1024)
    out_odd = jax.block_until_ready(out_odd)
    assert jnp.allclose(out_odd, ref_odd, rtol=2e-3, atol=2e-3), "mismatch (two-pass)"

    # default path for tiny inputs (jnp short-circuit), semantics preserved
    out_sc = jax.block_until_ready(input_spike_image_forward(x))
    assert jnp.allclose(out_sc, ref, rtol=1e-5, atol=1e-5), "mismatch (short-circuit)"

    print("KERNEL_OK")
</pallas_src>

<mosaic_0001>
module attributes {stable_mosaic.version = 11 : i64} {
  func.func @_normalize_rows_kernel(%arg0: i32, %arg1: memref<2x1024xf32, #tpu.memory_space<vmem>>, %arg2: memref<2x1024xf32, #tpu.memory_space<vmem>>) attributes {dimension_semantics = [#tpu.dimension_semantics<parallel>], iteration_bounds = array<i64: 1>, scalar_prefetch = 0 : i64, scratch_operands = 0 : i64, tpu.core_type = #tpu.core_type<tc>, window_params = [{transform_indices = @transform_0, window_bounds = array<i64: 2, 1024>}, {transform_indices = @transform_1, window_bounds = array<i64: 2, 1024>}]} {
    %c0 = arith.constant 0 : index
    %c0_0 = arith.constant 0 : index
    %0 = vector.load %arg1[%c0, %c0_0] : memref<2x1024xf32, #tpu.memory_space<vmem>>, vector<2x1024xf32>
    %cst = arith.constant dense<0.000000e+00> : vector<2xf32>
    %1 = vector.multi_reduction <add>, %0, %cst [1] : vector<2x1024xf32> to vector<2xf32>
    %2 = vector.shape_cast %1 : vector<2xf32> to vector<2x1xf32>
    %3 = tpu.reciprocal %2 {approx = true} : vector<2x1xf32> -> vector<2x1xf32>
    %cst_1 = arith.constant 1.024000e+03 : f32
    %4 = vector.broadcast %cst_1 : f32 to vector<2x1xf32>
    %5 = arith.mulf %4, %3 : vector<2x1xf32>
    %6 = vector.broadcast %5 : vector<2x1xf32> to vector<2x1024xf32>
    %7 = arith.mulf %0, %6 : vector<2x1024xf32>
    %c0_2 = arith.constant 0 : index
    %c0_3 = arith.constant 0 : index
    %8 = vector.load %arg2[%c0_2, %c0_3] : memref<2x1024xf32, #tpu.memory_space<vmem>>, vector<2x1024xf32>
    tpu.vector_store %arg2[%c0_2, %c0_3], %7 {strides = array<i32>} : memref<2x1024xf32, #tpu.memory_space<vmem>>, vector<2x1024xf32>,
    return
  }
  func.func @transform_0(%arg0: i32) -> (i32, i32) {
    %c0_i32 = arith.constant 0 : i32
    %c0_i32_0 = arith.constant 0 : i32
    return %arg0, %c0_i32 : i32, i32
  }
  func.func @transform_1(%arg0: i32) -> (i32, i32) {
    %c0_i32 = arith.constant 0 : i32
    %c0_i32_0 = arith.constant 0 : i32
    return %arg0, %c0_i32 : i32, i32
  }
}

</mosaic_0001>

<bundles_post_ra>
// kernel: tpu_custom_call.1
= control target key start
LH: loop header
LB: loop body
LE: loop exit
PB: predicated region body
PF: predicated region fallthrough
CT: control target
= control target key end

     0   :  { %6 = vsyncpa [#allocation3], 0  ;;  %s177_s0 = inlined_call_operand.hbm [shape: f32[2,1024], index: 0, kind: input, shape index: {}]   ;;  %s178_s1 = inlined_call_operand.hbm [shape: f32[2,1024], index: 1, kind: output, shape index: {}]  }
   0x1   :  { %7 = vsyncpa [#allocation4], 0  ;;  %s13_s8 = sshll.u32 %s177_s0, 4  ;;  %s150_s9 = smov [#allocation2]   ;;  %s14_s8 = int_to_ptr.hbm [resolvable:$true] %s13_s8 }
   0x2   :  { %s15_s10 = sshll.u32 %s150_s9, 4  ;;  %s16_s10 = int_to_ptr.vmem [resolvable:$true] %s15_s10 }
   0x3   :  { %18 = dma.hbm_to_vmem [thread:$0]  %s14_s8, 256, %s16_s10, [#allocation3]  }
   0x4   :  { %146 = dma.done.wait [#allocation3], 256  }
   0x5   :  { %147 = vsyncadd [#allocation3], 4294967040  ;;  %v23_v0 = vld [vmem:[#allocation2] sm:$0xff]  ;;  %v24_v1 = vld [vmem:[#allocation2 + $0x8] sm:$0xff]  ;;  %vm46_vm0 = vcmask 1041408   ;;  %s152_s0 = smov [#allocation5]  }
   0x6   :  { %27 = vst [vmem:[#allocation1] ss:$4 sm:$0xff] %v23_v0  ;;  %v151_v26 = vmov 269488144   ;;  %s81_s11 = sshll.u32 %s152_s0, 4  ;;  %s83_s14 = sshll.u32 %s178_s1, 4  ;;  %s82_s11 = int_to_ptr.vmem [resolvable:$true] %s81_s11  ;;  %s84_s14 = int_to_ptr.hbm [resolvable:$true] %s83_s14 }
   0x7   :  { %29 = vst [vmem:[#allocation1 + $0x20] ss:$4 sm:$0xff] %v24_v1  ;;  %v68_v27 = vunpack.c.l.s4 %v151_v26 }
   0x9   :  { %v69_v28 = vunpack.c.0.s8 %v68_v27 }
   0xd   :  { %v30_v2 = vld.sshfl [vmem:[#allocation1] sm:$0xff pattern:$0x73625140]  ;;  %v31_v3 = vld.sshfl [vmem:[#allocation1 + $0x8] sm:$0xff pattern:$0x73625140] }
   0xe   :  { %v32_v4 = vld.sshfl [vmem:[#allocation1 + $0x10] sm:$0xff pattern:$0x73625140]  ;;  %v33_v5 = vld.sshfl [vmem:[#allocation1 + $0x18] sm:$0xff pattern:$0x73625140] }
   0xf   :  { %v47_v6 = vsel %vm46_vm0, %v30_v2, 0.0  ;;  %v48_v7 = vsel %vm46_vm0, %v31_v3, 0.0  ;;  %v50_v8 = vsel %vm46_vm0, %v32_v4, 0.0  ;;  %v34_v9 = vld.sshfl [vmem:[#allocation1 + $0x20] sm:$0xff pattern:$0x73625140] }
  0x10   :  { %v49_v10 = vadd.f32 %v48_v7, %v47_v6  ;;  %v52_v11 = vsel %vm46_vm0, %v33_v5, 0.0  ;;  %v35_v12 = vld.sshfl [vmem:[#allocation1 + $0x28] sm:$0xff pattern:$0x73625140]  ;;  %v54_v14 = vsel %vm46_vm0, %v34_v9, 0.0 }
  0x11   :  { %v36_v15 = vld.sshfl [vmem:[#allocation1 + $0x30] sm:$0xff pattern:$0x73625140]  ;;  %v56_v17 = vsel %vm46_vm0, %v35_v12, 0.0 }
  0x12   :  { %v51_v13 = vadd.f32 %v50_v8, %v49_v10  ;;  %v37_v18 = vld.sshfl [vmem:[#allocation1 + $0x38] sm:$0xff pattern:$0x73625140]  ;;  %v58_v20 = vsel %vm46_vm0, %v36_v15, 0.0 }
  0x13   :  { %v60_v22 = vsel %vm46_vm0, %v37_v18, 0.0 }
  0x14   :  { %v53_v16 = vadd.f32 %v52_v11, %v51_v13 }
  0x16   :  { %v55_v19 = vadd.f32 %v54_v14, %v53_v16 }
  0x18   :  { %v57_v21 = vadd.f32 %v56_v17, %v55_v19 }
  0x1a   :  { %v59_v23 = vadd.f32 %v58_v20, %v57_v21 }
  0x1c   :  { %v61_v24 = vadd.f32 %v60_v22, %v59_v23 }
  0x1e   :  { %62 = vadd.xlane.f32.xlu0 %v61_v24 }
  0x91   :  { %v63_v25 = vpop.xlane.xlu0 %62 }
  0x92   :  { %96 = vrcp.f32 %v63_v25 }
  0x98   :  { %v97_v29 = vpop.eup %96 }
  0x99   :  { %v65_v30 = vmul.f32 1024.0, %v97_v29 }
  0x9b   :  { %v70_v31 = vperm.slane %v65_v30, %v69_v28 }
  0x9d   :  { %v72_v32 = vmul.f32 %v70_v31, %v23_v0  ;;  %v73_v33 = vmul.f32 %v70_v31, %v24_v1 }
  0x9f   :  { %74 = vst [vmem:[#allocation5] sm:$0xff] %v72_v32 }
  0xa0   :  { %75 = vst [vmem:[#allocation5 + $0x8] sm:$0xff] %v73_v33 }
  0xa1   :  { %86 = dma.vmem_to_hbm [thread:$0]  %s82_s11, 256, %s84_s14, [#allocation4]  }
  0xa2   :  { %148 = dma.done.wait [#allocation4], 256  }
  0xa3   :  { %149 = vsyncadd [#allocation4], 4294967040 }
  0xa4   :  { %91 = vsyncpa [#allocation3], 1 }
  0xa5   :  { %92 = vsyncpa [#allocation4], 1 }

</bundles_post_ra>
